<compile_context>
chip_gen: v6e
topology: v6e:2x2x1
jax: 0.10.0
libtpu: 0.0.40
codegen_flags: <defaults>
</compile_context>

<pallas_src>
import functools
from typing import Optional, Union

import jax
import jax.numpy as jnp
import numpy as np
from jax.experimental import pallas as pl
from jax.experimental.pallas import tpu as pltpu

IntOrPair = Union[int, tuple]


def force_pair(v: IntOrPair):
    if isinstance(v, tuple):
        if len(v) != 2:
            raise ValueError(v)
        return (int(v[0]), int(v[1]))
    elif isinstance(v, int):
        return (v, v)
    raise ValueError(v)


def _round_up(a: int, m: int) -> int:
    return ((a + m - 1) // m) * m


def _pool_init_value(dtype):
    """Identity element of `max` for this dtype (used for the virtual padding)."""
    dtype = jnp.dtype(dtype)
    if jnp.issubdtype(dtype, jnp.floating):
        return dtype.type(-jnp.inf)
    if jnp.issubdtype(dtype, jnp.integer):
        return dtype.type(jnp.iinfo(dtype).min)
    raise TypeError(f"maxpool2d_pallas: unsupported dtype {dtype}")


def _maxpool_kernel(x_ref, o_ref, *, kh, kw, sh, sw):
    """One channel-group tile: x_ref (PH, PW, gb, L) -> o_ref (OH, OW, gb, L).

    Layout: gb (channel groups) on sublanes, L (channels) on lanes; padded H
    and W are leading dims.  The block arrives already spatially padded with
    the max-identity, so the body is pure per-lane VPU work: no masks, no XLU,
    no scratch, no VMEM->VMEM copies.
    """
    padded_h, padded_w, gb, lanes = x_ref.shape
    oh, ow = o_ref.shape[0], o_ref.shape[1]
    hq, wq = padded_h // sh, padded_w // sw

    # ---- height taps: output row o needs padded rows {o*sh + dh}.  View PH as
    # (hq, sh) -- a free leading-dim reshape -- so each tap is a static slice +
    # static index; the kh-way max is pure VPU work.
    xp = x_ref[...].reshape(hq, sh, padded_w, gb, lanes)
    y = None
    for dh in range(kh):
        q0, t = divmod(dh, sh)
        tap = xp[q0:q0 + oh, t]                       # (oh, PW, gb, L)
        y = tap if y is None else jnp.maximum(y, tap)

    # ---- width taps: same trick on the (leading) W axis of the intermediate.
    y = y.reshape(oh, wq, sw, gb, lanes)
    out = None
    for dw in range(kw):
        q0, t = divmod(dw, sw)
        tap = y[:, q0:q0 + ow, t]                     # (oh, ow, gb, L)
        out = tap if out is None else jnp.maximum(out, tap)

    o_ref[...] = out.astype(o_ref.dtype)


def _maxpool2d_hwn(x_hwn, kernel_size: IntOrPair, stride: Optional[IntOrPair] = None,
                   padding: IntOrPair = 0, *, block_bytes: Optional[int] = None):
    """Core pooling on channels-last data: x (H, W, N) -> (OH, OW, N).

    Callers that can produce / consume this layout directly avoid the
    NCHW<->HWN transposes in `maxpool2d_pallas` (full HBM round trips).
    """
    kh, kw = force_pair(kernel_size)
    sh, sw = (kh, kw) if stride is None else force_pair(stride)
    ph, pw = force_pair(padding)
    if kh <= 0 or kw <= 0 or sh <= 0 or sw <= 0 or ph < 0 or pw < 0:
        raise ValueError("invalid pooling parameters")

    H, W, N = x_hwn.shape
    OH = (H + 2 * ph - kh) // sh + 1
    OW = (W + 2 * pw - kw) // sw + 1
    if OH <= 0 or OW <= 0:
        raise ValueError("output spatial size would be non-positive")

    dtype = jnp.dtype(x_hwn.dtype)
    itemsize = dtype.itemsize
    init = _pool_init_value(dtype)
    # dtype-native sublane packing multiple: 8 (f32), 16 (bf16), 32 (int8/fp8).
    sub_mult = max(8, 32 // itemsize)

    # --- lane-dense layout: channels on lanes, channel-groups on sublanes ---
    L = min(N, 128)                      # lane width (see small-N TODO above)
    G = pl.cdiv(N, L)                    # channel groups (sublane axis)

    # Padded spatial extents: multiples of the stride (for the in-kernel tap
    # views), large enough for every tap and to hold the data after the pad.
    hq = max(OH + (kh - 1) // sh, pl.cdiv(ph + H, sh))
    wq = max(OW + (kw - 1) // sw, pl.cdiv(pw + W, sw))
    PH, PW = hq * sh, wq * sw

    # --- per-generation block sizing & VMEM budget --------------------------
    try:
        vmem_cap = int(pltpu.get_tpu_info().vmem_capacity_bytes)
    except Exception:
        vmem_cap = 64 << 20                        # conservative (v7x per-core)
    if block_bytes is None:
        # v5e/v6e (128 MiB VMEM): ~8 MiB input blocks; v7x (64 MiB): ~4 MiB.
        block_bytes = (8 << 20) if vmem_cap >= (96 << 20) else (4 << 20)
    vmem_budget = int(min(0.70 * vmem_cap, 96 << 20))

    lanes_r = 128                                  # lane dim tile-rounds to 128
    in_per_g = PH * PW * lanes_r * itemsize
    out_per_g = OH * OW * lanes_r * itemsize
    # in: 2 pipeline buffers + xp/y temporaries ~4x; out: 2 buffers + temp ~3x.
    need_per_g = 4 * in_per_g + 3 * out_per_g

    gb = max(1, min(block_bytes // max(in_per_g, 1),
                    (vmem_budget - (2 << 20)) // max(need_per_g, 1),
                    G))
    # Keep the grid at >=2 (ideally >=4) steps when the group count allows it:
    # needed for v7x megacore sharding of the "parallel" axis and pipelining.
    if G >= 2 * sub_mult:
        gb = min(gb, _round_up(pl.cdiv(G, 2), sub_mult))
    if G >= 8 * sub_mult:
        gb = min(gb, _round_up(pl.cdiv(G, 4), sub_mult))
    # (8,128)-rule legality + dtype-native sublane packing.
    if gb >= G:
        gb = G
    elif gb >= sub_mult:
        gb = (gb // sub_mult) * sub_mult
    elif gb >= 8:
        gb = (gb // 8) * 8
    else:
        gb = min(G, 8)

    g_pad = pl.cdiv(G, gb) * gb
    n_pad = g_pad * L

    # --- pad ONCE at HBM level (fuses with the caller's layout transform) ---
    # Spatial pad with the max-identity replaces the old per-step VMEM->VMEM
    # interior copy + border fills.  Lane/group padding (also the identity) is
    # dont-care data: it flows through the max and is sliced off below,
    # never read back.
    pads = ((ph, PH - ph - H), (pw, PW - pw - W), (0, n_pad - N))
    if any(lo or hi for lo, hi in pads):
        x_hwn = jnp.pad(x_hwn, pads, constant_values=init)
    xp = x_hwn.reshape(PH, PW, g_pad, L)

    # VMEM limit derived from the actual chosen tile (no pad scratch, no
    # assumed triple-buffering): 2x in + 2x out pipeline buffers plus the
    # xp/y in-kernel temporaries, with margin.
    gb_r = gb if gb % sub_mult == 0 else _round_up(gb, sub_mult)
    need = (4 * PH * PW + 3 * OH * OW) * gb_r * lanes_r * itemsize + (2 << 20)
    vmem_limit = int(min(max(need, 16 << 20), max(vmem_budget, 32 << 20)))

    kernel = functools.partial(_maxpool_kernel, kh=kh, kw=kw, sh=sh, sw=sw)
    out = pl.pallas_call(
        kernel,
        out_shape=jax.ShapeDtypeStruct((OH, OW, g_pad, L), dtype),
        grid=(g_pad // gb,),
        in_specs=[pl.BlockSpec((PH, PW, gb, L), lambda g: (0, 0, g, 0))],
        out_specs=pl.BlockSpec((OH, OW, gb, L), lambda g: (0, 0, g, 0)),
        compiler_params=pltpu.CompilerParams(
            dimension_semantics=("parallel",),
            vmem_limit_bytes=vmem_limit),
    )(xp)

    return out.reshape(OH, OW, n_pad)[:, :, :N]    # drop dont-care lane padding


def maxpool2d_pallas(x, kernel_size: IntOrPair, stride: Optional[IntOrPair] = None,
                     padding: IntOrPair = 0, *, block_bytes: Optional[int] = None):
    """PyTorch-semantics MaxPool2d forward on NCHW input, Pallas TPU backend."""
    B, C, H, W = x.shape
    N = B * C
    # NCHW -> (H, W, N): one HBM-level layout copy so the kernel sees a
    # lane-dense channels-last layout; the -inf spatial pad fuses into it.
    # Callers already holding channels-last data should call _maxpool2d_hwn
    # directly and skip both transposes (they dominate on low-BW chips).
    x_hwn = jnp.moveaxis(x.reshape(N, H, W), 0, -1)
    out = _maxpool2d_hwn(x_hwn, kernel_size, stride, padding, block_bytes=block_bytes)
    OH, OW = out.shape[0], out.shape[1]
    return jnp.moveaxis(out, -1, 0).reshape(B, C, OH, OW)


class MaxPool2d:
    """Pallas-backed equivalent of the provided MaxPool2d module.

    Note: padding defaults to 1 to match the *provided* module's __init__
    (this intentionally differs from torch.nn.MaxPool2d's default of 0).
    """

    def __init__(self, kernel_size: IntOrPair, stride: Optional[IntOrPair] = None,
                 padding: IntOrPair = 1):
        self.kernel_size = force_pair(kernel_size)
        self.stride = self.kernel_size if stride is None else force_pair(stride)
        self.padding = force_pair(padding)

    def __call__(self, x):
        return maxpool2d_pallas(x, kernel_size=self.kernel_size,
                                stride=self.stride, padding=self.padding)

    def extra_repr(self) -> str:
        return (f"MaxPool layer with kernel_size={self.kernel_size}, "
                f"stride={self.stride}, padding={self.padding}")


def _reference_maxpool(x, kernel_size, stride, padding):
    kh, kw = kernel_size
    sh, sw = stride
    ph, pw = padding
    xpad = jnp.pad(x, ((0, 0), (0, 0), (ph, ph), (pw, pw)),
                   constant_values=-jnp.inf)
    return jax.lax.reduce_window(
        xpad, -jnp.inf, jax.lax.max,
        window_dimensions=(1, 1, kh, kw),
        window_strides=(1, 1, sh, sw),
        padding="VALID",
    )


if __name__ == "__main__":
    key = jax.random.PRNGKey(0)

    # 1) Module defaults (kernel=2, stride=kernel, padding=1) on the shipped shape.
    x = jax.random.normal(key, (2, 4, 16, 16), dtype=jnp.float32)
    pool = MaxPool2d(kernel_size=2, stride=None, padding=1)
    out = jax.block_until_ready(pool(x))
    ref = _reference_maxpool(x, pool.kernel_size, pool.stride, pool.padding)
    assert out.shape == ref.shape, (out.shape, ref.shape)
    np.testing.assert_allclose(np.asarray(out), np.asarray(ref), rtol=0, atol=0)

    # 2) Overlapping windows: kernel=3, stride=2, padding=1.
    out2 = jax.block_until_ready(maxpool2d_pallas(x, 3, 2, 1))
    ref2 = _reference_maxpool(x, (3, 3), (2, 2), (1, 1))
    assert out2.shape == ref2.shape, (out2.shape, ref2.shape)
    np.testing.assert_allclose(np.asarray(out2), np.asarray(ref2), rtol=0, atol=0)

    # 3) N > 128 (exercises the channel-group / lane-padding path), no padding.
    x3 = jax.random.normal(jax.random.PRNGKey(1), (2, 72, 16, 16), dtype=jnp.float32)
    out3 = jax.block_until_ready(maxpool2d_pallas(x3, 2, None, 0))
    ref3 = _reference_maxpool(x3, (2, 2), (2, 2), (0, 0))
    assert out3.shape == ref3.shape, (out3.shape, ref3.shape)
    np.testing.assert_allclose(np.asarray(out3), np.asarray(ref3), rtol=0, atol=0)

    print("KERNEL_OK")
</pallas_src>

<mosaic_0001>
module attributes {stable_mosaic.version = 11 : i64} {
  func.func @_maxpool_kernel(%arg0: i32, %arg1: memref<18x18x1x8xf32, #tpu.memory_space<vmem>>, %arg2: memref<9x9x1x8xf32, #tpu.memory_space<vmem>>) attributes {dimension_semantics = [#tpu.dimension_semantics<parallel>], iteration_bounds = array<i64: 1>, scalar_prefetch = 0 : i64, scratch_operands = 0 : i64, tpu.core_type = #tpu.core_type<tc>, window_params = [{transform_indices = @transform_0, window_bounds = array<i64: 18, 18, 1, 8>}, {transform_indices = @transform_1, window_bounds = array<i64: 9, 9, 1, 8>}]} {
    %c0 = arith.constant 0 : index
    %c0_0 = arith.constant 0 : index
    %c0_1 = arith.constant 0 : index
    %c0_2 = arith.constant 0 : index
    %0 = vector.load %arg1[%c0, %c0_0, %c0_1, %c0_2] : memref<18x18x1x8xf32, #tpu.memory_space<vmem>>, vector<18x18x1x8xf32>
    %1 = vector.shape_cast %0 : vector<18x18x1x8xf32> to vector<9x2x18x1x8xf32>
    %2 = vector.extract_strided_slice %1 {offsets = [0, 0, 0, 0, 0], sizes = [9, 1, 18, 1, 8], strides = [1, 1, 1, 1, 1]} : vector<9x2x18x1x8xf32> to vector<9x1x18x1x8xf32>
    %3 = vector.shape_cast %2 : vector<9x1x18x1x8xf32> to vector<9x18x1x8xf32>
    %4 = vector.extract_strided_slice %1 {offsets = [0, 1, 0, 0, 0], sizes = [9, 1, 18, 1, 8], strides = [1, 1, 1, 1, 1]} : vector<9x2x18x1x8xf32> to vector<9x1x18x1x8xf32>
    %5 = vector.shape_cast %4 : vector<9x1x18x1x8xf32> to vector<9x18x1x8xf32>
    %6 = arith.maximumf %3, %5 : vector<9x18x1x8xf32>
    %7 = vector.shape_cast %6 : vector<9x18x1x8xf32> to vector<9x9x2x1x8xf32>
    %8 = vector.extract_strided_slice %7 {offsets = [0, 0, 0, 0, 0], sizes = [9, 9, 1, 1, 8], strides = [1, 1, 1, 1, 1]} : vector<9x9x2x1x8xf32> to vector<9x9x1x1x8xf32>
    %9 = vector.shape_cast %8 : vector<9x9x1x1x8xf32> to vector<9x9x1x8xf32>
    %10 = vector.extract_strided_slice %7 {offsets = [0, 0, 1, 0, 0], sizes = [9, 9, 1, 1, 8], strides = [1, 1, 1, 1, 1]} : vector<9x9x2x1x8xf32> to vector<9x9x1x1x8xf32>
    %11 = vector.shape_cast %10 : vector<9x9x1x1x8xf32> to vector<9x9x1x8xf32>
    %12 = arith.maximumf %9, %11 : vector<9x9x1x8xf32>
    %c0_3 = arith.constant 0 : index
    %c0_4 = arith.constant 0 : index
    %c0_5 = arith.constant 0 : index
    %c0_6 = arith.constant 0 : index
    %13 = vector.load %arg2[%c0_3, %c0_4, %c0_5, %c0_6] : memref<9x9x1x8xf32, #tpu.memory_space<vmem>>, vector<9x9x1x8xf32>
    tpu.vector_store %arg2[%c0_3, %c0_4, %c0_5, %c0_6], %12 {strides = array<i32>} : memref<9x9x1x8xf32, #tpu.memory_space<vmem>>, vector<9x9x1x8xf32>,
    return
  }
  func.func @transform_0(%arg0: i32) -> (i32, i32, i32, i32) {
    %c0_i32 = arith.constant 0 : i32
    %c0_i32_0 = arith.constant 0 : i32
    %c0_i32_1 = arith.constant 0 : i32
    %c0_i32_2 = arith.constant 0 : i32
    return %c0_i32, %c0_i32_0, %arg0, %c0_i32_1 : i32, i32, i32, i32
  }
  func.func @transform_1(%arg0: i32) -> (i32, i32, i32, i32) {
    %c0_i32 = arith.constant 0 : i32
    %c0_i32_0 = arith.constant 0 : i32
    %c0_i32_1 = arith.constant 0 : i32
    %c0_i32_2 = arith.constant 0 : i32
    return %c0_i32, %c0_i32_0, %arg0, %c0_i32_1 : i32, i32, i32, i32
  }
}

</mosaic_0001>

<bundles_post_ra>
// kernel: tpu_custom_call.1
= control target key start
LH: loop header
LB: loop body
LE: loop exit
PB: predicated region body
PF: predicated region fallthrough
CT: control target
= control target key end

     0   :  { %vm575_vm0 = vcmask 57344   ;;  %s1967_s0 = inlined_call_operand.vmem [shape: f32[18,18,1,8], index: 0, kind: input, shape index: {}]   ;;  %s1968_s1 = inlined_call_operand.vmem [shape: f32[9,9,1,8], index: 1, kind: output, shape index: {}]  }
   0x1   :  { %v8_v0 = vld [vmem:[%s1967_s0] sm:$0x1]  ;;  %v9_v1 = vld [vmem:[%s1967_s0 + $0x1] sm:$0x1]  ;;  %v26_v2 = vld [vmem:[%s1967_s0 + $0x12] sm:$0x1] }
   0x2   :  { %v27_v3 = vld [vmem:[%s1967_s0 + $0x13] sm:$0x1]  ;;  %v332_v4 = vmax.f32 %v8_v0, %v26_v2  ;;  %v10_v5 = vld [vmem:[%s1967_s0 + $0x2] sm:$0x1]  ;;  %v11_v6 = vld [vmem:[%s1967_s0 + $0x3] sm:$0x1] }
   0x3   :  { %v333_v7 = vmax.f32 %v9_v1, %v27_v3  ;;  %v28_v8 = vld [vmem:[%s1967_s0 + $0x14] sm:$0x1]  ;;  %v29_v9 = vld [vmem:[%s1967_s0 + $0x15] sm:$0x1]  ;;  %v12_v10 = vld [vmem:[%s1967_s0 + $0x4] sm:$0x1] }
   0x4   :  { %v334_v11 = vmax.f32 %v10_v5, %v28_v8  ;;  %v335_v12 = vmax.f32 %v11_v6, %v29_v9  ;;  %v13_v13 = vld [vmem:[%s1967_s0 + $0x5] sm:$0x1]  ;;  %v30_v14 = vld [vmem:[%s1967_s0 + $0x16] sm:$0x1]  ;;  %v31_v15 = vld [vmem:[%s1967_s0 + $0x17] sm:$0x1] }
   0x5   :  { %v494_v16 = vmax.f32 %v332_v4, %v333_v7  ;;  %v336_v17 = vmax.f32 %v12_v10, %v30_v14  ;;  %v337_v18 = vmax.f32 %v13_v13, %v31_v15  ;;  %v14_v19 = vld [vmem:[%s1967_s0 + $0x6] sm:$0x1]  ;;  %v15_v20 = vld [vmem:[%s1967_s0 + $0x7] sm:$0x1]  ;;  %v32_v21 = vld [vmem:[%s1967_s0 + $0x18] sm:$0x1] }
   0x6   :  { %v495_v22 = vmax.f32 %v334_v11, %v335_v12  ;;  %v33_v23 = vld [vmem:[%s1967_s0 + $0x19] sm:$0x1]  ;;  %v338_v24 = vmax.f32 %v14_v19, %v32_v21  ;;  %v16_v25 = vld [vmem:[%s1967_s0 + $0x8] sm:$0x1]  ;;  %v17_v26 = vld [vmem:[%s1967_s0 + $0x9] sm:$0x1] }
   0x7   :  { %576 = vst.msk [vmem:[%s1968_s1] sm:$0x1] %vm575_vm0, %v494_v16  ;;  %v496_v27 = vmax.f32 %v336_v17, %v337_v18  ;;  %v339_v28 = vmax.f32 %v15_v20, %v33_v23  ;;  %v34_v29 = vld [vmem:[%s1967_s0 + $0x1a] sm:$0x1]  ;;  %v35_v30 = vld [vmem:[%s1967_s0 + $0x1b] sm:$0x1] }
   0x8   :  { %v18_v31 = vld [vmem:[%s1967_s0 + $0xa] sm:$0x1]  ;;  %577 = vst.msk [vmem:[%s1968_s1 + $0x1] sm:$0x1] %vm575_vm0, %v495_v22  ;;  %v340_v32 = vmax.f32 %v16_v25, %v34_v29  ;;  %v341_v33 = vmax.f32 %v17_v26, %v35_v30  ;;  %v19_v34 = vld [vmem:[%s1967_s0 + $0xb] sm:$0x1] }
   0x9   :  { %v36_v35 = vld [vmem:[%s1967_s0 + $0x1c] sm:$0x1]  ;;  %v37_v36 = vld [vmem:[%s1967_s0 + $0x1d] sm:$0x1]  ;;  %578 = vst.msk [vmem:[%s1968_s1 + $0x2] sm:$0x1] %vm575_vm0, %v496_v27  ;;  %v497_v37 = vmax.f32 %v338_v24, %v339_v28 }
   0xa   :  { %v342_v38 = vmax.f32 %v18_v31, %v36_v35  ;;  %v343_v39 = vmax.f32 %v19_v34, %v37_v36  ;;  %v20_v40 = vld [vmem:[%s1967_s0 + $0xc] sm:$0x1]  ;;  %v21_v41 = vld [vmem:[%s1967_s0 + $0xd] sm:$0x1]  ;;  %v38_v42 = vld [vmem:[%s1967_s0 + $0x1e] sm:$0x1]  ;;  %v498_v43 = vmax.f32 %v340_v32, %v341_v33 }
   0xb   :  { %v39_v44 = vld [vmem:[%s1967_s0 + $0x1f] sm:$0x1]  ;;  %v344_v45 = vmax.f32 %v20_v40, %v38_v42  ;;  %v22_v46 = vld [vmem:[%s1967_s0 + $0xe] sm:$0x1]  ;;  %v23_v47 = vld [vmem:[%s1967_s0 + $0xf] sm:$0x1] }
   0xc   :  { %579 = vst.msk [vmem:[%s1968_s1 + $0x3] sm:$0x1] %vm575_vm0, %v497_v37  ;;  %v499_v48 = vmax.f32 %v342_v38, %v343_v39  ;;  %v345_v49 = vmax.f32 %v21_v41, %v39_v44  ;;  %v40_v50 = vld [vmem:[%s1967_s0 + $0x20] sm:$0x1]  ;;  %v41_v51 = vld [vmem:[%s1967_s0 + $0x21] sm:$0x1] }
   0xd   :  { %v24_v52 = vld [vmem:[%s1967_s0 + $0x10] sm:$0x1]  ;;  %580 = vst.msk [vmem:[%s1968_s1 + $0x4] sm:$0x1] %vm575_vm0, %v498_v43  ;;  %v346_v53 = vmax.f32 %v22_v46, %v40_v50  ;;  %v347_v54 = vmax.f32 %v23_v47, %v41_v51  ;;  %v25_v55 = vld [vmem:[%s1967_s0 + $0x11] sm:$0x1] }
   0xe   :  { %v42_v56 = vld [vmem:[%s1967_s0 + $0x22] sm:$0x1]  ;;  %v43_v57 = vld [vmem:[%s1967_s0 + $0x23] sm:$0x1]  ;;  %581 = vst.msk [vmem:[%s1968_s1 + $0x5] sm:$0x1] %vm575_vm0, %v499_v48  ;;  %v500_v58 = vmax.f32 %v344_v45, %v345_v49 }
   0xf   :  { %v348_v59 = vmax.f32 %v24_v52, %v42_v56  ;;  %v349_v60 = vmax.f32 %v25_v55, %v43_v57  ;;  %v44_v61 = vld [vmem:[%s1967_s0 + $0x24] sm:$0x1]  ;;  %v45_v62 = vld [vmem:[%s1967_s0 + $0x25] sm:$0x1]  ;;  %v62_v63 = vld [vmem:[%s1967_s0 + $0x36] sm:$0x1]  ;;  %v501_v0 = vmax.f32 %v346_v53, %v347_v54 }
  0x10   :  { %v63_v1 = vld [vmem:[%s1967_s0 + $0x37] sm:$0x1]  ;;  %v350_v2 = vmax.f32 %v44_v61, %v62_v63  ;;  %v46_v3 = vld [vmem:[%s1967_s0 + $0x26] sm:$0x1]  ;;  %v47_v4 = vld [vmem:[%s1967_s0 + $0x27] sm:$0x1] }
  0x11   :  { %582 = vst.msk [vmem:[%s1968_s1 + $0x6] sm:$0x1] %vm575_vm0, %v500_v58  ;;  %v502_v5 = vmax.f32 %v348_v59, %v349_v60  ;;  %v351_v6 = vmax.f32 %v45_v62, %v63_v1  ;;  %v64_v7 = vld [vmem:[%s1967_s0 + $0x38] sm:$0x1]  ;;  %v65_v8 = vld [vmem:[%s1967_s0 + $0x39] sm:$0x1] }
  0x12   :  { %v48_v9 = vld [vmem:[%s1967_s0 + $0x28] sm:$0x1]  ;;  %583 = vst.msk [vmem:[%s1968_s1 + $0x7] sm:$0x1] %vm575_vm0, %v501_v0  ;;  %v352_v10 = vmax.f32 %v46_v3, %v64_v7  ;;  %v353_v11 = vmax.f32 %v47_v4, %v65_v8  ;;  %v49_v12 = vld [vmem:[%s1967_s0 + $0x29] sm:$0x1] }
  0x13   :  { %v66_v13 = vld [vmem:[%s1967_s0 + $0x3a] sm:$0x1]  ;;  %v67_v14 = vld [vmem:[%s1967_s0 + $0x3b] sm:$0x1]  ;;  %584 = vst.msk [vmem:[%s1968_s1 + $0x8] sm:$0x1] %vm575_vm0, %v502_v5  ;;  %v503_v15 = vmax.f32 %v350_v2, %v351_v6 }
  0x14   :  { %v354_v16 = vmax.f32 %v48_v9, %v66_v13  ;;  %v355_v17 = vmax.f32 %v49_v12, %v67_v14  ;;  %v50_v18 = vld [vmem:[%s1967_s0 + $0x2a] sm:$0x1]  ;;  %v51_v19 = vld [vmem:[%s1967_s0 + $0x2b] sm:$0x1]  ;;  %v68_v20 = vld [vmem:[%s1967_s0 + $0x3c] sm:$0x1]  ;;  %v504_v21 = vmax.f32 %v352_v10, %v353_v11 }
  0x15   :  { %v69_v22 = vld [vmem:[%s1967_s0 + $0x3d] sm:$0x1]  ;;  %v356_v23 = vmax.f32 %v50_v18, %v68_v20  ;;  %v52_v24 = vld [vmem:[%s1967_s0 + $0x2c] sm:$0x1]  ;;  %v53_v25 = vld [vmem:[%s1967_s0 + $0x2d] sm:$0x1] }
  0x16   :  { %585 = vst.msk [vmem:[%s1968_s1 + $0x9] sm:$0x1] %vm575_vm0, %v503_v15  ;;  %v505_v26 = vmax.f32 %v354_v16, %v355_v17  ;;  %v357_v27 = vmax.f32 %v51_v19, %v69_v22  ;;  %v70_v28 = vld [vmem:[%s1967_s0 + $0x3e] sm:$0x1]  ;;  %v71_v29 = vld [vmem:[%s1967_s0 + $0x3f] sm:$0x1] }
  0x17   :  { %v54_v30 = vld [vmem:[%s1967_s0 + $0x2e] sm:$0x1]  ;;  %586 = vst.msk [vmem:[%s1968_s1 + $0xa] sm:$0x1] %vm575_vm0, %v504_v21  ;;  %v358_v31 = vmax.f32 %v52_v24, %v70_v28  ;;  %v359_v32 = vmax.f32 %v53_v25, %v71_v29  ;;  %v55_v33 = vld [vmem:[%s1967_s0 + $0x2f] sm:$0x1] }
  0x18   :  { %v72_v34 = vld [vmem:[%s1967_s0 + $0x40] sm:$0x1]  ;;  %v73_v35 = vld [vmem:[%s1967_s0 + $0x41] sm:$0x1]  ;;  %587 = vst.msk [vmem:[%s1968_s1 + $0xb] sm:$0x1] %vm575_vm0, %v505_v26  ;;  %v506_v36 = vmax.f32 %v356_v23, %v357_v27 }
  0x19   :  { %v360_v37 = vmax.f32 %v54_v30, %v72_v34  ;;  %v361_v38 = vmax.f32 %v55_v33, %v73_v35  ;;  %v56_v39 = vld [vmem:[%s1967_s0 + $0x30] sm:$0x1]  ;;  %v57_v40 = vld [vmem:[%s1967_s0 + $0x31] sm:$0x1]  ;;  %v74_v41 = vld [vmem:[%s1967_s0 + $0x42] sm:$0x1]  ;;  %v507_v42 = vmax.f32 %v358_v31, %v359_v32 }
  0x1a   :  { %v75_v43 = vld [vmem:[%s1967_s0 + $0x43] sm:$0x1]  ;;  %v362_v44 = vmax.f32 %v56_v39, %v74_v41  ;;  %v58_v45 = vld [vmem:[%s1967_s0 + $0x32] sm:$0x1]  ;;  %v59_v46 = vld [vmem:[%s1967_s0 + $0x33] sm:$0x1] }
  0x1b   :  { %588 = vst.msk [vmem:[%s1968_s1 + $0xc] sm:$0x1] %vm575_vm0, %v506_v36  ;;  %v508_v47 = vmax.f32 %v360_v37, %v361_v38  ;;  %v363_v48 = vmax.f32 %v57_v40, %v75_v43  ;;  %v76_v49 = vld [vmem:[%s1967_s0 + $0x44] sm:$0x1]  ;;  %v77_v50 = vld [vmem:[%s1967_s0 + $0x45] sm:$0x1] }
  0x1c   :  { %v60_v51 = vld [vmem:[%s1967_s0 + $0x34] sm:$0x1]  ;;  %589 = vst.msk [vmem:[%s1968_s1 + $0xd] sm:$0x1] %vm575_vm0, %v507_v42  ;;  %v364_v52 = vmax.f32 %v58_v45, %v76_v49  ;;  %v365_v53 = vmax.f32 %v59_v46, %v77_v50  ;;  %v61_v54 = vld [vmem:[%s1967_s0 + $0x35] sm:$0x1] }
  0x1d   :  { %v78_v55 = vld [vmem:[%s1967_s0 + $0x46] sm:$0x1]  ;;  %v79_v56 = vld [vmem:[%s1967_s0 + $0x47] sm:$0x1]  ;;  %590 = vst.msk [vmem:[%s1968_s1 + $0xe] sm:$0x1] %vm575_vm0, %v508_v47  ;;  %v509_v57 = vmax.f32 %v362_v44, %v363_v48 }
  0x1e   :  { %v366_v58 = vmax.f32 %v60_v51, %v78_v55  ;;  %v367_v59 = vmax.f32 %v61_v54, %v79_v56  ;;  %v80_v60 = vld [vmem:[%s1967_s0 + $0x48] sm:$0x1]  ;;  %v81_v61 = vld [vmem:[%s1967_s0 + $0x49] sm:$0x1]  ;;  %v98_v62 = vld [vmem:[%s1967_s0 + $0x5a] sm:$0x1]  ;;  %v510_v63 = vmax.f32 %v364_v52, %v365_v53 }
  0x1f   :  { %v99_v0 = vld [vmem:[%s1967_s0 + $0x5b] sm:$0x1]  ;;  %v368_v1 = vmax.f32 %v80_v60, %v98_v62  ;;  %v82_v2 = vld [vmem:[%s1967_s0 + $0x4a] sm:$0x1]  ;;  %v83_v3 = vld [vmem:[%s1967_s0 + $0x4b] sm:$0x1] }
  0x20   :  { %591 = vst.msk [vmem:[%s1968_s1 + $0xf] sm:$0x1] %vm575_vm0, %v509_v57  ;;  %v511_v4 = vmax.f32 %v366_v58, %v367_v59  ;;  %v369_v5 = vmax.f32 %v81_v61, %v99_v0  ;;  %v100_v6 = vld [vmem:[%s1967_s0 + $0x5c] sm:$0x1]  ;;  %v101_v7 = vld [vmem:[%s1967_s0 + $0x5d] sm:$0x1] }
  0x21   :  { %v84_v8 = vld [vmem:[%s1967_s0 + $0x4c] sm:$0x1]  ;;  %592 = vst.msk [vmem:[%s1968_s1 + $0x10] sm:$0x1] %vm575_vm0, %v510_v63  ;;  %v370_v9 = vmax.f32 %v82_v2, %v100_v6  ;;  %v371_v10 = vmax.f32 %v83_v3, %v101_v7  ;;  %v85_v11 = vld [vmem:[%s1967_s0 + $0x4d] sm:$0x1] }
  0x22   :  { %v102_v12 = vld [vmem:[%s1967_s0 + $0x5e] sm:$0x1]  ;;  %v103_v13 = vld [vmem:[%s1967_s0 + $0x5f] sm:$0x1]  ;;  %593 = vst.msk [vmem:[%s1968_s1 + $0x11] sm:$0x1] %vm575_vm0, %v511_v4  ;;  %v512_v14 = vmax.f32 %v368_v1, %v369_v5 }
  0x23   :  { %v372_v15 = vmax.f32 %v84_v8, %v102_v12  ;;  %v373_v16 = vmax.f32 %v85_v11, %v103_v13  ;;  %v86_v17 = vld [vmem:[%s1967_s0 + $0x4e] sm:$0x1]  ;;  %v87_v18 = vld [vmem:[%s1967_s0 + $0x4f] sm:$0x1]  ;;  %v104_v19 = vld [vmem:[%s1967_s0 + $0x60] sm:$0x1]  ;;  %v513_v20 = vmax.f32 %v370_v9, %v371_v10 }
  0x24   :  { %v105_v21 = vld [vmem:[%s1967_s0 + $0x61] sm:$0x1]  ;;  %v374_v22 = vmax.f32 %v86_v17, %v104_v19  ;;  %v88_v23 = vld [vmem:[%s1967_s0 + $0x50] sm:$0x1]  ;;  %v89_v24 = vld [vmem:[%s1967_s0 + $0x51] sm:$0x1] }
  0x25   :  { %594 = vst.msk [vmem:[%s1968_s1 + $0x12] sm:$0x1] %vm575_vm0, %v512_v14  ;;  %v514_v25 = vmax.f32 %v372_v15, %v373_v16  ;;  %v375_v26 = vmax.f32 %v87_v18, %v105_v21  ;;  %v106_v27 = vld [vmem:[%s1967_s0 + $0x62] sm:$0x1]  ;;  %v107_v28 = vld [vmem:[%s1967_s0 + $0x63] sm:$0x1] }
  0x26   :  { %v90_v29 = vld [vmem:[%s1967_s0 + $0x52] sm:$0x1]  ;;  %595 = vst.msk [vmem:[%s1968_s1 + $0x13] sm:$0x1] %vm575_vm0, %v513_v20  ;;  %v376_v30 = vmax.f32 %v88_v23, %v106_v27  ;;  %v377_v31 = vmax.f32 %v89_v24, %v107_v28  ;;  %v91_v32 = vld [vmem:[%s1967_s0 + $0x53] sm:$0x1] }
  0x27   :  { %v108_v33 = vld [vmem:[%s1967_s0 + $0x64] sm:$0x1]  ;;  %v109_v34 = vld [vmem:[%s1967_s0 + $0x65] sm:$0x1]  ;;  %596 = vst.msk [vmem:[%s1968_s1 + $0x14] sm:$0x1] %vm575_vm0, %v514_v25  ;;  %v515_v35 = vmax.f32 %v374_v22, %v375_v26 }
  0x28   :  { %v378_v36 = vmax.f32 %v90_v29, %v108_v33  ;;  %v379_v37 = vmax.f32 %v91_v32, %v109_v34  ;;  %v92_v38 = vld [vmem:[%s1967_s0 + $0x54] sm:$0x1]  ;;  %v93_v39 = vld [vmem:[%s1967_s0 + $0x55] sm:$0x1]  ;;  %v110_v40 = vld [vmem:[%s1967_s0 + $0x66] sm:$0x1]  ;;  %v516_v41 = vmax.f32 %v376_v30, %v377_v31 }
  0x29   :  { %v111_v42 = vld [vmem:[%s1967_s0 + $0x67] sm:$0x1]  ;;  %v380_v43 = vmax.f32 %v92_v38, %v110_v40  ;;  %v94_v44 = vld [vmem:[%s1967_s0 + $0x56] sm:$0x1]  ;;  %v95_v45 = vld [vmem:[%s1967_s0 + $0x57] sm:$0x1] }
  0x2a   :  { %597 = vst.msk [vmem:[%s1968_s1 + $0x15] sm:$0x1] %vm575_vm0, %v515_v35  ;;  %v517_v46 = vmax.f32 %v378_v36, %v379_v37  ;;  %v381_v47 = vmax.f32 %v93_v39, %v111_v42  ;;  %v112_v48 = vld [vmem:[%s1967_s0 + $0x68] sm:$0x1]  ;;  %v113_v49 = vld [vmem:[%s1967_s0 + $0x69] sm:$0x1] }
  0x2b   :  { %v96_v50 = vld [vmem:[%s1967_s0 + $0x58] sm:$0x1]  ;;  %598 = vst.msk [vmem:[%s1968_s1 + $0x16] sm:$0x1] %vm575_vm0, %v516_v41  ;;  %v382_v51 = vmax.f32 %v94_v44, %v112_v48  ;;  %v383_v52 = vmax.f32 %v95_v45, %v113_v49  ;;  %v97_v53 = vld [vmem:[%s1967_s0 + $0x59] sm:$0x1] }
  0x2c   :  { %v114_v54 = vld [vmem:[%s1967_s0 + $0x6a] sm:$0x1]  ;;  %v115_v55 = vld [vmem:[%s1967_s0 + $0x6b] sm:$0x1]  ;;  %599 = vst.msk [vmem:[%s1968_s1 + $0x17] sm:$0x1] %vm575_vm0, %v517_v46  ;;  %v518_v56 = vmax.f32 %v380_v43, %v381_v47 }
  0x2d   :  { %v384_v57 = vmax.f32 %v96_v50, %v114_v54  ;;  %v385_v58 = vmax.f32 %v97_v53, %v115_v55  ;;  %v116_v59 = vld [vmem:[%s1967_s0 + $0x6c] sm:$0x1]  ;;  %v117_v60 = vld [vmem:[%s1967_s0 + $0x6d] sm:$0x1]  ;;  %v134_v61 = vld [vmem:[%s1967_s0 + $0x7e] sm:$0x1]  ;;  %v519_v62 = vmax.f32 %v382_v51, %v383_v52 }
  0x2e   :  { %v135_v63 = vld [vmem:[%s1967_s0 + $0x7f] sm:$0x1]  ;;  %v386_v0 = vmax.f32 %v116_v59, %v134_v61  ;;  %v118_v1 = vld [vmem:[%s1967_s0 + $0x6e] sm:$0x1]  ;;  %v119_v2 = vld [vmem:[%s1967_s0 + $0x6f] sm:$0x1] }
  0x2f   :  { %600 = vst.msk [vmem:[%s1968_s1 + $0x18] sm:$0x1] %vm575_vm0, %v518_v56  ;;  %v520_v3 = vmax.f32 %v384_v57, %v385_v58  ;;  %v387_v4 = vmax.f32 %v117_v60, %v135_v63  ;;  %v136_v5 = vld [vmem:[%s1967_s0 + $0x80] sm:$0x1]  ;;  %v137_v6 = vld [vmem:[%s1967_s0 + $0x81] sm:$0x1] }
  0x30   :  { %v120_v7 = vld [vmem:[%s1967_s0 + $0x70] sm:$0x1]  ;;  %601 = vst.msk [vmem:[%s1968_s1 + $0x19] sm:$0x1] %vm575_vm0, %v519_v62  ;;  %v388_v8 = vmax.f32 %v118_v1, %v136_v5  ;;  %v389_v9 = vmax.f32 %v119_v2, %v137_v6  ;;  %v121_v10 = vld [vmem:[%s1967_s0 + $0x71] sm:$0x1] }
  0x31   :  { %v138_v11 = vld [vmem:[%s1967_s0 + $0x82] sm:$0x1]  ;;  %v139_v12 = vld [vmem:[%s1967_s0 + $0x83] sm:$0x1]  ;;  %602 = vst.msk [vmem:[%s1968_s1 + $0x1a] sm:$0x1] %vm575_vm0, %v520_v3  ;;  %v521_v13 = vmax.f32 %v386_v0, %v387_v4 }
  0x32   :  { %v390_v14 = vmax.f32 %v120_v7, %v138_v11  ;;  %v391_v15 = vmax.f32 %v121_v10, %v139_v12  ;;  %v122_v16 = vld [vmem:[%s1967_s0 + $0x72] sm:$0x1]  ;;  %v123_v17 = vld [vmem:[%s1967_s0 + $0x73] sm:$0x1]  ;;  %v140_v18 = vld [vmem:[%s1967_s0 + $0x84] sm:$0x1]  ;;  %v522_v19 = vmax.f32 %v388_v8, %v389_v9 }
  0x33   :  { %v141_v20 = vld [vmem:[%s1967_s0 + $0x85] sm:$0x1]  ;;  %v392_v21 = vmax.f32 %v122_v16, %v140_v18  ;;  %v124_v22 = vld [vmem:[%s1967_s0 + $0x74] sm:$0x1]  ;;  %v125_v23 = vld [vmem:[%s1967_s0 + $0x75] sm:$0x1] }
  0x34   :  { %603 = vst.msk [vmem:[%s1968_s1 + $0x1b] sm:$0x1] %vm575_vm0, %v521_v13  ;;  %v523_v24 = vmax.f32 %v390_v14, %v391_v15  ;;  %v393_v25 = vmax.f32 %v123_v17, %v141_v20  ;;  %v142_v26 = vld [vmem:[%s1967_s0 + $0x86] sm:$0x1]  ;;  %v143_v27 = vld [vmem:[%s1967_s0 + $0x87] sm:$0x1] }
  0x35   :  { %v126_v28 = vld [vmem:[%s1967_s0 + $0x76] sm:$0x1]  ;;  %604 = vst.msk [vmem:[%s1968_s1 + $0x1c] sm:$0x1] %vm575_vm0, %v522_v19  ;;  %v394_v29 = vmax.f32 %v124_v22, %v142_v26  ;;  %v395_v30 = vmax.f32 %v125_v23, %v143_v27  ;;  %v127_v31 = vld [vmem:[%s1967_s0 + $0x77] sm:$0x1] }
  0x36   :  { %v144_v32 = vld [vmem:[%s1967_s0 + $0x88] sm:$0x1]  ;;  %v145_v33 = vld [vmem:[%s1967_s0 + $0x89] sm:$0x1]  ;;  %605 = vst.msk [vmem:[%s1968_s1 + $0x1d] sm:$0x1] %vm575_vm0, %v523_v24  ;;  %v524_v34 = vmax.f32 %v392_v21, %v393_v25 }
  0x37   :  { %v396_v35 = vmax.f32 %v126_v28, %v144_v32  ;;  %v397_v36 = vmax.f32 %v127_v31, %v145_v33  ;;  %v128_v37 = vld [vmem:[%s1967_s0 + $0x78] sm:$0x1]  ;;  %v129_v38 = vld [vmem:[%s1967_s0 + $0x79] sm:$0x1]  ;;  %v146_v39 = vld [vmem:[%s1967_s0 + $0x8a] sm:$0x1]  ;;  %v525_v40 = vmax.f32 %v394_v29, %v395_v30 }
  0x38   :  { %v147_v41 = vld [vmem:[%s1967_s0 + $0x8b] sm:$0x1]  ;;  %v398_v42 = vmax.f32 %v128_v37, %v146_v39  ;;  %v130_v43 = vld [vmem:[%s1967_s0 + $0x7a] sm:$0x1]  ;;  %v131_v44 = vld [vmem:[%s1967_s0 + $0x7b] sm:$0x1] }
  0x39   :  { %606 = vst.msk [vmem:[%s1968_s1 + $0x1e] sm:$0x1] %vm575_vm0, %v524_v34  ;;  %v526_v45 = vmax.f32 %v396_v35, %v397_v36  ;;  %v399_v46 = vmax.f32 %v129_v38, %v147_v41  ;;  %v148_v47 = vld [vmem:[%s1967_s0 + $0x8c] sm:$0x1]  ;;  %v149_v48 = vld [vmem:[%s1967_s0 + $0x8d] sm:$0x1] }
  0x3a   :  { %v132_v49 = vld [vmem:[%s1967_s0 + $0x7c] sm:$0x1]  ;;  %607 = vst.msk [vmem:[%s1968_s1 + $0x1f] sm:$0x1] %vm575_vm0, %v525_v40  ;;  %v400_v50 = vmax.f32 %v130_v43, %v148_v47  ;;  %v401_v51 = vmax.f32 %v131_v44, %v149_v48  ;;  %v133_v52 = vld [vmem:[%s1967_s0 + $0x7d] sm:$0x1] }
  0x3b   :  { %v150_v53 = vld [vmem:[%s1967_s0 + $0x8e] sm:$0x1]  ;;  %v151_v54 = vld [vmem:[%s1967_s0 + $0x8f] sm:$0x1]  ;;  %608 = vst.msk [vmem:[%s1968_s1 + $0x20] sm:$0x1] %vm575_vm0, %v526_v45  ;;  %v527_v55 = vmax.f32 %v398_v42, %v399_v46 }
  0x3c   :  { %v402_v56 = vmax.f32 %v132_v49, %v150_v53  ;;  %v403_v57 = vmax.f32 %v133_v52, %v151_v54  ;;  %v152_v58 = vld [vmem:[%s1967_s0 + $0x90] sm:$0x1]  ;;  %v153_v59 = vld [vmem:[%s1967_s0 + $0x91] sm:$0x1]  ;;  %v170_v60 = vld [vmem:[%s1967_s0 + $0xa2] sm:$0x1]  ;;  %v528_v61 = vmax.f32 %v400_v50, %v401_v51 }
  0x3d   :  { %v171_v62 = vld [vmem:[%s1967_s0 + $0xa3] sm:$0x1]  ;;  %v404_v63 = vmax.f32 %v152_v58, %v170_v60  ;;  %v154_v0 = vld [vmem:[%s1967_s0 + $0x92] sm:$0x1]  ;;  %v155_v1 = vld [vmem:[%s1967_s0 + $0x93] sm:$0x1] }
  0x3e   :  { %609 = vst.msk [vmem:[%s1968_s1 + $0x21] sm:$0x1] %vm575_vm0, %v527_v55  ;;  %v529_v2 = vmax.f32 %v402_v56, %v403_v57  ;;  %v405_v3 = vmax.f32 %v153_v59, %v171_v62  ;;  %v172_v4 = vld [vmem:[%s1967_s0 + $0xa4] sm:$0x1]  ;;  %v173_v5 = vld [vmem:[%s1967_s0 + $0xa5] sm:$0x1] }
  0x3f   :  { %v156_v6 = vld [vmem:[%s1967_s0 + $0x94] sm:$0x1]  ;;  %610 = vst.msk [vmem:[%s1968_s1 + $0x22] sm:$0x1] %vm575_vm0, %v528_v61  ;;  %v406_v7 = vmax.f32 %v154_v0, %v172_v4  ;;  %v407_v8 = vmax.f32 %v155_v1, %v173_v5  ;;  %v157_v9 = vld [vmem:[%s1967_s0 + $0x95] sm:$0x1] }
  0x40   :  { %v174_v10 = vld [vmem:[%s1967_s0 + $0xa6] sm:$0x1]  ;;  %v175_v11 = vld [vmem:[%s1967_s0 + $0xa7] sm:$0x1]  ;;  %611 = vst.msk [vmem:[%s1968_s1 + $0x23] sm:$0x1] %vm575_vm0, %v529_v2  ;;  %v530_v12 = vmax.f32 %v404_v63, %v405_v3 }
  0x41   :  { %v408_v13 = vmax.f32 %v156_v6, %v174_v10  ;;  %v409_v14 = vmax.f32 %v157_v9, %v175_v11  ;;  %v158_v15 = vld [vmem:[%s1967_s0 + $0x96] sm:$0x1]  ;;  %v159_v16 = vld [vmem:[%s1967_s0 + $0x97] sm:$0x1]  ;;  %v176_v17 = vld [vmem:[%s1967_s0 + $0xa8] sm:$0x1]  ;;  %v531_v18 = vmax.f32 %v406_v7, %v407_v8 }
  0x42   :  { %v177_v19 = vld [vmem:[%s1967_s0 + $0xa9] sm:$0x1]  ;;  %v410_v20 = vmax.f32 %v158_v15, %v176_v17  ;;  %v160_v21 = vld [vmem:[%s1967_s0 + $0x98] sm:$0x1]  ;;  %v161_v22 = vld [vmem:[%s1967_s0 + $0x99] sm:$0x1] }
  0x43   :  { %612 = vst.msk [vmem:[%s1968_s1 + $0x24] sm:$0x1] %vm575_vm0, %v530_v12  ;;  %v532_v23 = vmax.f32 %v408_v13, %v409_v14  ;;  %v411_v24 = vmax.f32 %v159_v16, %v177_v19  ;;  %v178_v25 = vld [vmem:[%s1967_s0 + $0xaa] sm:$0x1]  ;;  %v179_v26 = vld [vmem:[%s1967_s0 + $0xab] sm:$0x1] }
  0x44   :  { %v162_v27 = vld [vmem:[%s1967_s0 + $0x9a] sm:$0x1]  ;;  %613 = vst.msk [vmem:[%s1968_s1 + $0x25] sm:$0x1] %vm575_vm0, %v531_v18  ;;  %v412_v28 = vmax.f32 %v160_v21, %v178_v25  ;;  %v413_v29 = vmax.f32 %v161_v22, %v179_v26  ;;  %v163_v30 = vld [vmem:[%s1967_s0 + $0x9b] sm:$0x1] }
  0x45   :  { %v180_v31 = vld [vmem:[%s1967_s0 + $0xac] sm:$0x1]  ;;  %v181_v32 = vld [vmem:[%s1967_s0 + $0xad] sm:$0x1]  ;;  %614 = vst.msk [vmem:[%s1968_s1 + $0x26] sm:$0x1] %vm575_vm0, %v532_v23  ;;  %v533_v33 = vmax.f32 %v410_v20, %v411_v24 }
  0x46   :  { %v414_v34 = vmax.f32 %v162_v27, %v180_v31  ;;  %v415_v35 = vmax.f32 %v163_v30, %v181_v32  ;;  %v164_v36 = vld [vmem:[%s1967_s0 + $0x9c] sm:$0x1]  ;;  %v165_v37 = vld [vmem:[%s1967_s0 + $0x9d] sm:$0x1]  ;;  %v182_v38 = vld [vmem:[%s1967_s0 + $0xae] sm:$0x1]  ;;  %v534_v39 = vmax.f32 %v412_v28, %v413_v29 }
  0x47   :  { %v183_v40 = vld [vmem:[%s1967_s0 + $0xaf] sm:$0x1]  ;;  %v416_v41 = vmax.f32 %v164_v36, %v182_v38  ;;  %v166_v42 = vld [vmem:[%s1967_s0 + $0x9e] sm:$0x1]  ;;  %v167_v43 = vld [vmem:[%s1967_s0 + $0x9f] sm:$0x1] }
  0x48   :  { %615 = vst.msk [vmem:[%s1968_s1 + $0x27] sm:$0x1] %vm575_vm0, %v533_v33  ;;  %v535_v44 = vmax.f32 %v414_v34, %v415_v35  ;;  %v417_v45 = vmax.f32 %v165_v37, %v183_v40  ;;  %v184_v46 = vld [vmem:[%s1967_s0 + $0xb0] sm:$0x1]  ;;  %v185_v47 = vld [vmem:[%s1967_s0 + $0xb1] sm:$0x1] }
  0x49   :  { %v168_v48 = vld [vmem:[%s1967_s0 + $0xa0] sm:$0x1]  ;;  %616 = vst.msk [vmem:[%s1968_s1 + $0x28] sm:$0x1] %vm575_vm0, %v534_v39  ;;  %v418_v49 = vmax.f32 %v166_v42, %v184_v46  ;;  %v419_v50 = vmax.f32 %v167_v43, %v185_v47  ;;  %v169_v51 = vld [vmem:[%s1967_s0 + $0xa1] sm:$0x1] }
  0x4a   :  { %v186_v52 = vld [vmem:[%s1967_s0 + $0xb2] sm:$0x1]  ;;  %v187_v53 = vld [vmem:[%s1967_s0 + $0xb3] sm:$0x1]  ;;  %617 = vst.msk [vmem:[%s1968_s1 + $0x29] sm:$0x1] %vm575_vm0, %v535_v44  ;;  %v536_v54 = vmax.f32 %v416_v41, %v417_v45 }
  0x4b   :  { %v420_v55 = vmax.f32 %v168_v48, %v186_v52  ;;  %v421_v56 = vmax.f32 %v169_v51, %v187_v53  ;;  %v188_v57 = vld [vmem:[%s1967_s0 + $0xb4] sm:$0x1]  ;;  %v189_v58 = vld [vmem:[%s1967_s0 + $0xb5] sm:$0x1]  ;;  %v206_v59 = vld [vmem:[%s1967_s0 + $0xc6] sm:$0x1]  ;;  %v537_v60 = vmax.f32 %v418_v49, %v419_v50 }
  0x4c   :  { %v207_v61 = vld [vmem:[%s1967_s0 + $0xc7] sm:$0x1]  ;;  %v422_v62 = vmax.f32 %v188_v57, %v206_v59  ;;  %v190_v63 = vld [vmem:[%s1967_s0 + $0xb6] sm:$0x1]  ;;  %v191_v0 = vld [vmem:[%s1967_s0 + $0xb7] sm:$0x1] }
  0x4d   :  { %618 = vst.msk [vmem:[%s1968_s1 + $0x2a] sm:$0x1] %vm575_vm0, %v536_v54  ;;  %v538_v1 = vmax.f32 %v420_v55, %v421_v56  ;;  %v423_v2 = vmax.f32 %v189_v58, %v207_v61  ;;  %v208_v3 = vld [vmem:[%s1967_s0 + $0xc8] sm:$0x1]  ;;  %v209_v4 = vld [vmem:[%s1967_s0 + $0xc9] sm:$0x1] }
  0x4e   :  { %v192_v5 = vld [vmem:[%s1967_s0 + $0xb8] sm:$0x1]  ;;  %619 = vst.msk [vmem:[%s1968_s1 + $0x2b] sm:$0x1] %vm575_vm0, %v537_v60  ;;  %v424_v6 = vmax.f32 %v190_v63, %v208_v3  ;;  %v425_v7 = vmax.f32 %v191_v0, %v209_v4  ;;  %v193_v8 = vld [vmem:[%s1967_s0 + $0xb9] sm:$0x1] }
  0x4f   :  { %v210_v9 = vld [vmem:[%s1967_s0 + $0xca] sm:$0x1]  ;;  %v211_v10 = vld [vmem:[%s1967_s0 + $0xcb] sm:$0x1]  ;;  %620 = vst.msk [vmem:[%s1968_s1 + $0x2c] sm:$0x1] %vm575_vm0, %v538_v1  ;;  %v539_v11 = vmax.f32 %v422_v62, %v423_v2 }
  0x50   :  { %v426_v12 = vmax.f32 %v192_v5, %v210_v9  ;;  %v427_v13 = vmax.f32 %v193_v8, %v211_v10  ;;  %v194_v14 = vld [vmem:[%s1967_s0 + $0xba] sm:$0x1]  ;;  %v195_v15 = vld [vmem:[%s1967_s0 + $0xbb] sm:$0x1]  ;;  %v212_v16 = vld [vmem:[%s1967_s0 + $0xcc] sm:$0x1]  ;;  %v540_v17 = vmax.f32 %v424_v6, %v425_v7 }
  0x51   :  { %v213_v18 = vld [vmem:[%s1967_s0 + $0xcd] sm:$0x1]  ;;  %v428_v19 = vmax.f32 %v194_v14, %v212_v16  ;;  %v196_v20 = vld [vmem:[%s1967_s0 + $0xbc] sm:$0x1]  ;;  %v197_v21 = vld [vmem:[%s1967_s0 + $0xbd] sm:$0x1] }
  0x52   :  { %621 = vst.msk [vmem:[%s1968_s1 + $0x2d] sm:$0x1] %vm575_vm0, %v539_v11  ;;  %v541_v22 = vmax.f32 %v426_v12, %v427_v13  ;;  %v429_v23 = vmax.f32 %v195_v15, %v213_v18  ;;  %v214_v24 = vld [vmem:[%s1967_s0 + $0xce] sm:$0x1]  ;;  %v215_v25 = vld [vmem:[%s1967_s0 + $0xcf] sm:$0x1] }
  0x53   :  { %v198_v26 = vld [vmem:[%s1967_s0 + $0xbe] sm:$0x1]  ;;  %622 = vst.msk [vmem:[%s1968_s1 + $0x2e] sm:$0x1] %vm575_vm0, %v540_v17  ;;  %v430_v27 = vmax.f32 %v196_v20, %v214_v24  ;;  %v431_v28 = vmax.f32 %v197_v21, %v215_v25  ;;  %v199_v29 = vld [vmem:[%s1967_s0 + $0xbf] sm:$0x1] }
  0x54   :  { %v216_v30 = vld [vmem:[%s1967_s0 + $0xd0] sm:$0x1]  ;;  %v217_v31 = vld [vmem:[%s1967_s0 + $0xd1] sm:$0x1]  ;;  %623 = vst.msk [vmem:[%s1968_s1 + $0x2f] sm:$0x1] %vm575_vm0, %v541_v22  ;;  %v542_v32 = vmax.f32 %v428_v19, %v429_v23 }
  0x55   :  { %v432_v33 = vmax.f32 %v198_v26, %v216_v30  ;;  %v433_v34 = vmax.f32 %v199_v29, %v217_v31  ;;  %v200_v35 = vld [vmem:[%s1967_s0 + $0xc0] sm:$0x1]  ;;  %v201_v36 = vld [vmem:[%s1967_s0 + $0xc1] sm:$0x1]  ;;  %v218_v37 = vld [vmem:[%s1967_s0 + $0xd2] sm:$0x1]  ;;  %v543_v38 = vmax.f32 %v430_v27, %v431_v28 }
  0x56   :  { %v219_v39 = vld [vmem:[%s1967_s0 + $0xd3] sm:$0x1]  ;;  %v434_v40 = vmax.f32 %v200_v35, %v218_v37  ;;  %v202_v41 = vld [vmem:[%s1967_s0 + $0xc2] sm:$0x1]  ;;  %v203_v42 = vld [vmem:[%s1967_s0 + $0xc3] sm:$0x1] }
  0x57   :  { %624 = vst.msk [vmem:[%s1968_s1 + $0x30] sm:$0x1] %vm575_vm0, %v542_v32  ;;  %v544_v43 = vmax.f32 %v432_v33, %v433_v34  ;;  %v435_v44 = vmax.f32 %v201_v36, %v219_v39  ;;  %v220_v45 = vld [vmem:[%s1967_s0 + $0xd4] sm:$0x1]  ;;  %v221_v46 = vld [vmem:[%s1967_s0 + $0xd5] sm:$0x1] }
  0x58   :  { %v204_v47 = vld [vmem:[%s1967_s0 + $0xc4] sm:$0x1]  ;;  %625 = vst.msk [vmem:[%s1968_s1 + $0x31] sm:$0x1] %vm575_vm0, %v543_v38  ;;  %v436_v48 = vmax.f32 %v202_v41, %v220_v45  ;;  %v437_v49 = vmax.f32 %v203_v42, %v221_v46  ;;  %v205_v50 = vld [vmem:[%s1967_s0 + $0xc5] sm:$0x1] }
  0x59   :  { %v222_v51 = vld [vmem:[%s1967_s0 + $0xd6] sm:$0x1]  ;;  %v223_v52 = vld [vmem:[%s1967_s0 + $0xd7] sm:$0x1]  ;;  %626 = vst.msk [vmem:[%s1968_s1 + $0x32] sm:$0x1] %vm575_vm0, %v544_v43  ;;  %v545_v53 = vmax.f32 %v434_v40, %v435_v44 }
  0x5a   :  { %v438_v54 = vmax.f32 %v204_v47, %v222_v51  ;;  %v439_v55 = vmax.f32 %v205_v50, %v223_v52  ;;  %v224_v56 = vld [vmem:[%s1967_s0 + $0xd8] sm:$0x1]  ;;  %v225_v57 = vld [vmem:[%s1967_s0 + $0xd9] sm:$0x1]  ;;  %v242_v58 = vld [vmem:[%s1967_s0 + $0xea] sm:$0x1]  ;;  %v546_v59 = vmax.f32 %v436_v48, %v437_v49 }
  0x5b   :  { %v243_v60 = vld [vmem:[%s1967_s0 + $0xeb] sm:$0x1]  ;;  %v440_v61 = vmax.f32 %v224_v56, %v242_v58  ;;  %v226_v62 = vld [vmem:[%s1967_s0 + $0xda] sm:$0x1]  ;;  %v227_v63 = vld [vmem:[%s1967_s0 + $0xdb] sm:$0x1] }
  0x5c   :  { %627 = vst.msk [vmem:[%s1968_s1 + $0x33] sm:$0x1] %vm575_vm0, %v545_v53  ;;  %v547_v0 = vmax.f32 %v438_v54, %v439_v55  ;;  %v441_v1 = vmax.f32 %v225_v57, %v243_v60  ;;  %v244_v2 = vld [vmem:[%s1967_s0 + $0xec] sm:$0x1]  ;;  %v245_v3 = vld [vmem:[%s1967_s0 + $0xed] sm:$0x1] }
  0x5d   :  { %v228_v4 = vld [vmem:[%s1967_s0 + $0xdc] sm:$0x1]  ;;  %628 = vst.msk [vmem:[%s1968_s1 + $0x34] sm:$0x1] %vm575_vm0, %v546_v59  ;;  %v442_v5 = vmax.f32 %v226_v62, %v244_v2  ;;  %v443_v6 = vmax.f32 %v227_v63, %v245_v3  ;;  %v229_v7 = vld [vmem:[%s1967_s0 + $0xdd] sm:$0x1] }
  0x5e   :  { %v246_v8 = vld [vmem:[%s1967_s0 + $0xee] sm:$0x1]  ;;  %v247_v9 = vld [vmem:[%s1967_s0 + $0xef] sm:$0x1]  ;;  %629 = vst.msk [vmem:[%s1968_s1 + $0x35] sm:$0x1] %vm575_vm0, %v547_v0  ;;  %v548_v10 = vmax.f32 %v440_v61, %v441_v1 }
  0x5f   :  { %v444_v11 = vmax.f32 %v228_v4, %v246_v8  ;;  %v445_v12 = vmax.f32 %v229_v7, %v247_v9  ;;  %v230_v13 = vld [vmem:[%s1967_s0 + $0xde] sm:$0x1]  ;;  %v231_v14 = vld [vmem:[%s1967_s0 + $0xdf] sm:$0x1]  ;;  %v248_v15 = vld [vmem:[%s1967_s0 + $0xf0] sm:$0x1]  ;;  %v549_v16 = vmax.f32 %v442_v5, %v443_v6 }
  0x60   :  { %v249_v17 = vld [vmem:[%s1967_s0 + $0xf1] sm:$0x1]  ;;  %v446_v18 = vmax.f32 %v230_v13, %v248_v15  ;;  %v232_v19 = vld [vmem:[%s1967_s0 + $0xe0] sm:$0x1]  ;;  %v233_v20 = vld [vmem:[%s1967_s0 + $0xe1] sm:$0x1] }
  0x61   :  { %630 = vst.msk [vmem:[%s1968_s1 + $0x36] sm:$0x1] %vm575_vm0, %v548_v10  ;;  %v550_v21 = vmax.f32 %v444_v11, %v445_v12  ;;  %v447_v22 = vmax.f32 %v231_v14, %v249_v17  ;;  %v250_v23 = vld [vmem:[%s1967_s0 + $0xf2] sm:$0x1]  ;;  %v251_v24 = vld [vmem:[%s1967_s0 + $0xf3] sm:$0x1] }
  0x62   :  { %v234_v25 = vld [vmem:[%s1967_s0 + $0xe2] sm:$0x1]  ;;  %631 = vst.msk [vmem:[%s1968_s1 + $0x37] sm:$0x1] %vm575_vm0, %v549_v16  ;;  %v448_v26 = vmax.f32 %v232_v19, %v250_v23  ;;  %v449_v27 = vmax.f32 %v233_v20, %v251_v24  ;;  %v235_v28 = vld [vmem:[%s1967_s0 + $0xe3] sm:$0x1] }
  0x63   :  { %v252_v29 = vld [vmem:[%s1967_s0 + $0xf4] sm:$0x1]  ;;  %v253_v30 = vld [vmem:[%s1967_s0 + $0xf5] sm:$0x1]  ;;  %632 = vst.msk [vmem:[%s1968_s1 + $0x38] sm:$0x1] %vm575_vm0, %v550_v21  ;;  %v551_v31 = vmax.f32 %v446_v18, %v447_v22 }
  0x64   :  { %v450_v32 = vmax.f32 %v234_v25, %v252_v29  ;;  %v451_v33 = vmax.f32 %v235_v28, %v253_v30  ;;  %v236_v34 = vld [vmem:[%s1967_s0 + $0xe4] sm:$0x1]  ;;  %v237_v35 = vld [vmem:[%s1967_s0 + $0xe5] sm:$0x1]  ;;  %v254_v36 = vld [vmem:[%s1967_s0 + $0xf6] sm:$0x1]  ;;  %v552_v37 = vmax.f32 %v448_v26, %v449_v27 }
  0x65   :  { %v255_v38 = vld [vmem:[%s1967_s0 + $0xf7] sm:$0x1]  ;;  %v452_v39 = vmax.f32 %v236_v34, %v254_v36  ;;  %v238_v40 = vld [vmem:[%s1967_s0 + $0xe6] sm:$0x1]  ;;  %v239_v41 = vld [vmem:[%s1967_s0 + $0xe7] sm:$0x1] }
  0x66   :  { %633 = vst.msk [vmem:[%s1968_s1 + $0x39] sm:$0x1] %vm575_vm0, %v551_v31  ;;  %v553_v42 = vmax.f32 %v450_v32, %v451_v33  ;;  %v453_v43 = vmax.f32 %v237_v35, %v255_v38  ;;  %v256_v44 = vld [vmem:[%s1967_s0 + $0xf8] sm:$0x1]  ;;  %v257_v45 = vld [vmem:[%s1967_s0 + $0xf9] sm:$0x1] }
  0x67   :  { %v240_v46 = vld [vmem:[%s1967_s0 + $0xe8] sm:$0x1]  ;;  %634 = vst.msk [vmem:[%s1968_s1 + $0x3a] sm:$0x1] %vm575_vm0, %v552_v37  ;;  %v454_v47 = vmax.f32 %v238_v40, %v256_v44  ;;  %v455_v48 = vmax.f32 %v239_v41, %v257_v45  ;;  %v241_v49 = vld [vmem:[%s1967_s0 + $0xe9] sm:$0x1] }
  0x68   :  { %v258_v50 = vld [vmem:[%s1967_s0 + $0xfa] sm:$0x1]  ;;  %v259_v51 = vld [vmem:[%s1967_s0 + $0xfb] sm:$0x1]  ;;  %635 = vst.msk [vmem:[%s1968_s1 + $0x3b] sm:$0x1] %vm575_vm0, %v553_v42  ;;  %v554_v52 = vmax.f32 %v452_v39, %v453_v43 }
  0x69   :  { %v456_v53 = vmax.f32 %v240_v46, %v258_v50  ;;  %v457_v54 = vmax.f32 %v241_v49, %v259_v51  ;;  %v260_v55 = vld [vmem:[%s1967_s0 + $0xfc] sm:$0x1]  ;;  %v261_v56 = vld [vmem:[%s1967_s0 + $0xfd] sm:$0x1]  ;;  %v278_v57 = vld [vmem:[%s1967_s0 + $0x10e] sm:$0x1]  ;;  %v555_v58 = vmax.f32 %v454_v47, %v455_v48 }
  0x6a   :  { %v279_v59 = vld [vmem:[%s1967_s0 + $0x10f] sm:$0x1]  ;;  %v458_v60 = vmax.f32 %v260_v55, %v278_v57  ;;  %v262_v61 = vld [vmem:[%s1967_s0 + $0xfe] sm:$0x1]  ;;  %v263_v62 = vld [vmem:[%s1967_s0 + $0xff] sm:$0x1] }
  0x6b   :  { %636 = vst.msk [vmem:[%s1968_s1 + $0x3c] sm:$0x1] %vm575_vm0, %v554_v52  ;;  %v556_v63 = vmax.f32 %v456_v53, %v457_v54  ;;  %v459_v0 = vmax.f32 %v261_v56, %v279_v59  ;;  %v280_v1 = vld [vmem:[%s1967_s0 + $0x110] sm:$0x1]  ;;  %v281_v2 = vld [vmem:[%s1967_s0 + $0x111] sm:$0x1] }
  0x6c   :  { %v264_v3 = vld [vmem:[%s1967_s0 + $0x100] sm:$0x1]  ;;  %637 = vst.msk [vmem:[%s1968_s1 + $0x3d] sm:$0x1] %vm575_vm0, %v555_v58  ;;  %v460_v4 = vmax.f32 %v262_v61, %v280_v1  ;;  %v461_v5 = vmax.f32 %v263_v62, %v281_v2  ;;  %v265_v6 = vld [vmem:[%s1967_s0 + $0x101] sm:$0x1] }
  0x6d   :  { %v282_v7 = vld [vmem:[%s1967_s0 + $0x112] sm:$0x1]  ;;  %v283_v8 = vld [vmem:[%s1967_s0 + $0x113] sm:$0x1]  ;;  %638 = vst.msk [vmem:[%s1968_s1 + $0x3e] sm:$0x1] %vm575_vm0, %v556_v63  ;;  %v557_v9 = vmax.f32 %v458_v60, %v459_v0 }
  0x6e   :  { %v462_v10 = vmax.f32 %v264_v3, %v282_v7  ;;  %v463_v11 = vmax.f32 %v265_v6, %v283_v8  ;;  %v266_v12 = vld [vmem:[%s1967_s0 + $0x102] sm:$0x1]  ;;  %v267_v13 = vld [vmem:[%s1967_s0 + $0x103] sm:$0x1]  ;;  %v284_v14 = vld [vmem:[%s1967_s0 + $0x114] sm:$0x1]  ;;  %v558_v15 = vmax.f32 %v460_v4, %v461_v5 }
  0x6f   :  { %v285_v16 = vld [vmem:[%s1967_s0 + $0x115] sm:$0x1]  ;;  %v464_v17 = vmax.f32 %v266_v12, %v284_v14  ;;  %v268_v18 = vld [vmem:[%s1967_s0 + $0x104] sm:$0x1]  ;;  %v269_v19 = vld [vmem:[%s1967_s0 + $0x105] sm:$0x1] }
  0x70   :  { %639 = vst.msk [vmem:[%s1968_s1 + $0x3f] sm:$0x1] %vm575_vm0, %v557_v9  ;;  %v559_v20 = vmax.f32 %v462_v10, %v463_v11  ;;  %v465_v21 = vmax.f32 %v267_v13, %v285_v16  ;;  %v286_v22 = vld [vmem:[%s1967_s0 + $0x116] sm:$0x1]  ;;  %v287_v23 = vld [vmem:[%s1967_s0 + $0x117] sm:$0x1] }
  0x71   :  { %v270_v24 = vld [vmem:[%s1967_s0 + $0x106] sm:$0x1]  ;;  %640 = vst.msk [vmem:[%s1968_s1 + $0x40] sm:$0x1] %vm575_vm0, %v558_v15  ;;  %v466_v25 = vmax.f32 %v268_v18, %v286_v22  ;;  %v467_v26 = vmax.f32 %v269_v19, %v287_v23  ;;  %v271_v27 = vld [vmem:[%s1967_s0 + $0x107] sm:$0x1] }
  0x72   :  { %v288_v28 = vld [vmem:[%s1967_s0 + $0x118] sm:$0x1]  ;;  %v289_v29 = vld [vmem:[%s1967_s0 + $0x119] sm:$0x1]  ;;  %641 = vst.msk [vmem:[%s1968_s1 + $0x41] sm:$0x1] %vm575_vm0, %v559_v20  ;;  %v560_v30 = vmax.f32 %v464_v17, %v465_v21 }
  0x73   :  { %v468_v31 = vmax.f32 %v270_v24, %v288_v28  ;;  %v469_v32 = vmax.f32 %v271_v27, %v289_v29  ;;  %v272_v33 = vld [vmem:[%s1967_s0 + $0x108] sm:$0x1]  ;;  %v273_v34 = vld [vmem:[%s1967_s0 + $0x109] sm:$0x1]  ;;  %v290_v35 = vld [vmem:[%s1967_s0 + $0x11a] sm:$0x1]  ;;  %v561_v36 = vmax.f32 %v466_v25, %v467_v26 }
  0x74   :  { %v291_v37 = vld [vmem:[%s1967_s0 + $0x11b] sm:$0x1]  ;;  %v470_v38 = vmax.f32 %v272_v33, %v290_v35  ;;  %v274_v39 = vld [vmem:[%s1967_s0 + $0x10a] sm:$0x1]  ;;  %v275_v40 = vld [vmem:[%s1967_s0 + $0x10b] sm:$0x1] }
  0x75   :  { %642 = vst.msk [vmem:[%s1968_s1 + $0x42] sm:$0x1] %vm575_vm0, %v560_v30  ;;  %v562_v41 = vmax.f32 %v468_v31, %v469_v32  ;;  %v471_v42 = vmax.f32 %v273_v34, %v291_v37  ;;  %v292_v43 = vld [vmem:[%s1967_s0 + $0x11c] sm:$0x1]  ;;  %v293_v44 = vld [vmem:[%s1967_s0 + $0x11d] sm:$0x1] }
  0x76   :  { %v276_v45 = vld [vmem:[%s1967_s0 + $0x10c] sm:$0x1]  ;;  %643 = vst.msk [vmem:[%s1968_s1 + $0x43] sm:$0x1] %vm575_vm0, %v561_v36  ;;  %v472_v46 = vmax.f32 %v274_v39, %v292_v43  ;;  %v473_v47 = vmax.f32 %v275_v40, %v293_v44  ;;  %v277_v48 = vld [vmem:[%s1967_s0 + $0x10d] sm:$0x1] }
  0x77   :  { %v294_v49 = vld [vmem:[%s1967_s0 + $0x11e] sm:$0x1]  ;;  %v295_v50 = vld [vmem:[%s1967_s0 + $0x11f] sm:$0x1]  ;;  %644 = vst.msk [vmem:[%s1968_s1 + $0x44] sm:$0x1] %vm575_vm0, %v562_v41  ;;  %v563_v51 = vmax.f32 %v470_v38, %v471_v42 }
  0x78   :  { %v474_v52 = vmax.f32 %v276_v45, %v294_v49  ;;  %v475_v53 = vmax.f32 %v277_v48, %v295_v50  ;;  %v296_v54 = vld [vmem:[%s1967_s0 + $0x120] sm:$0x1]  ;;  %v297_v55 = vld [vmem:[%s1967_s0 + $0x121] sm:$0x1]  ;;  %v314_v56 = vld [vmem:[%s1967_s0 + $0x132] sm:$0x1]  ;;  %v564_v57 = vmax.f32 %v472_v46, %v473_v47 }
  0x79   :  { %v315_v58 = vld [vmem:[%s1967_s0 + $0x133] sm:$0x1]  ;;  %v476_v59 = vmax.f32 %v296_v54, %v314_v56  ;;  %v298_v60 = vld [vmem:[%s1967_s0 + $0x122] sm:$0x1]  ;;  %v299_v61 = vld [vmem:[%s1967_s0 + $0x123] sm:$0x1] }
  0x7a   :  { %645 = vst.msk [vmem:[%s1968_s1 + $0x45] sm:$0x1] %vm575_vm0, %v563_v51  ;;  %v565_v62 = vmax.f32 %v474_v52, %v475_v53  ;;  %v477_v63 = vmax.f32 %v297_v55, %v315_v58  ;;  %v316_v0 = vld [vmem:[%s1967_s0 + $0x134] sm:$0x1]  ;;  %v317_v1 = vld [vmem:[%s1967_s0 + $0x135] sm:$0x1] }
  0x7b   :  { %v300_v2 = vld [vmem:[%s1967_s0 + $0x124] sm:$0x1]  ;;  %646 = vst.msk [vmem:[%s1968_s1 + $0x46] sm:$0x1] %vm575_vm0, %v564_v57  ;;  %v478_v3 = vmax.f32 %v298_v60, %v316_v0  ;;  %v479_v4 = vmax.f32 %v299_v61, %v317_v1  ;;  %v301_v5 = vld [vmem:[%s1967_s0 + $0x125] sm:$0x1] }
  0x7c   :  { %v318_v6 = vld [vmem:[%s1967_s0 + $0x136] sm:$0x1]  ;;  %v319_v7 = vld [vmem:[%s1967_s0 + $0x137] sm:$0x1]  ;;  %647 = vst.msk [vmem:[%s1968_s1 + $0x47] sm:$0x1] %vm575_vm0, %v565_v62  ;;  %v566_v8 = vmax.f32 %v476_v59, %v477_v63 }
  0x7d   :  { %v480_v9 = vmax.f32 %v300_v2, %v318_v6  ;;  %v481_v10 = vmax.f32 %v301_v5, %v319_v7  ;;  %v302_v11 = vld [vmem:[%s1967_s0 + $0x126] sm:$0x1]  ;;  %v303_v12 = vld [vmem:[%s1967_s0 + $0x127] sm:$0x1]  ;;  %v320_v13 = vld [vmem:[%s1967_s0 + $0x138] sm:$0x1]  ;;  %v567_v14 = vmax.f32 %v478_v3, %v479_v4 }
  0x7e   :  { %v321_v15 = vld [vmem:[%s1967_s0 + $0x139] sm:$0x1]  ;;  %v482_v16 = vmax.f32 %v302_v11, %v320_v13  ;;  %v304_v17 = vld [vmem:[%s1967_s0 + $0x128] sm:$0x1]  ;;  %v305_v18 = vld [vmem:[%s1967_s0 + $0x129] sm:$0x1] }
  0x7f   :  { %648 = vst.msk [vmem:[%s1968_s1 + $0x48] sm:$0x1] %vm575_vm0, %v566_v8  ;;  %v568_v19 = vmax.f32 %v480_v9, %v481_v10  ;;  %v483_v20 = vmax.f32 %v303_v12, %v321_v15  ;;  %v322_v21 = vld [vmem:[%s1967_s0 + $0x13a] sm:$0x1]  ;;  %v323_v22 = vld [vmem:[%s1967_s0 + $0x13b] sm:$0x1] }
  0x80   :  { %v306_v23 = vld [vmem:[%s1967_s0 + $0x12a] sm:$0x1]  ;;  %649 = vst.msk [vmem:[%s1968_s1 + $0x49] sm:$0x1] %vm575_vm0, %v567_v14  ;;  %v484_v24 = vmax.f32 %v304_v17, %v322_v21  ;;  %v485_v25 = vmax.f32 %v305_v18, %v323_v22  ;;  %v307_v26 = vld [vmem:[%s1967_s0 + $0x12b] sm:$0x1] }
  0x81   :  { %v324_v27 = vld [vmem:[%s1967_s0 + $0x13c] sm:$0x1]  ;;  %v325_v28 = vld [vmem:[%s1967_s0 + $0x13d] sm:$0x1]  ;;  %650 = vst.msk [vmem:[%s1968_s1 + $0x4a] sm:$0x1] %vm575_vm0, %v568_v19  ;;  %v569_v29 = vmax.f32 %v482_v16, %v483_v20 }
  0x82   :  { %v486_v30 = vmax.f32 %v306_v23, %v324_v27  ;;  %v487_v31 = vmax.f32 %v307_v26, %v325_v28  ;;  %v308_v32 = vld [vmem:[%s1967_s0 + $0x12c] sm:$0x1]  ;;  %v309_v33 = vld [vmem:[%s1967_s0 + $0x12d] sm:$0x1]  ;;  %v326_v34 = vld [vmem:[%s1967_s0 + $0x13e] sm:$0x1]  ;;  %v570_v35 = vmax.f32 %v484_v24, %v485_v25 }
  0x83   :  { %v327_v36 = vld [vmem:[%s1967_s0 + $0x13f] sm:$0x1]  ;;  %v488_v37 = vmax.f32 %v308_v32, %v326_v34  ;;  %v310_v38 = vld [vmem:[%s1967_s0 + $0x12e] sm:$0x1]  ;;  %v311_v39 = vld [vmem:[%s1967_s0 + $0x12f] sm:$0x1] }
  0x84   :  { %651 = vst.msk [vmem:[%s1968_s1 + $0x4b] sm:$0x1] %vm575_vm0, %v569_v29  ;;  %v571_v40 = vmax.f32 %v486_v30, %v487_v31  ;;  %v489_v41 = vmax.f32 %v309_v33, %v327_v36  ;;  %v328_v42 = vld [vmem:[%s1967_s0 + $0x140] sm:$0x1]  ;;  %v329_v43 = vld [vmem:[%s1967_s0 + $0x141] sm:$0x1] }
  0x85   :  { %v312_v44 = vld [vmem:[%s1967_s0 + $0x130] sm:$0x1]  ;;  %652 = vst.msk [vmem:[%s1968_s1 + $0x4c] sm:$0x1] %vm575_vm0, %v570_v35  ;;  %v490_v45 = vmax.f32 %v310_v38, %v328_v42  ;;  %v491_v46 = vmax.f32 %v311_v39, %v329_v43  ;;  %v313_v47 = vld [vmem:[%s1967_s0 + $0x131] sm:$0x1] }
  0x86   :  { %v330_v48 = vld [vmem:[%s1967_s0 + $0x142] sm:$0x1]  ;;  %v331_v49 = vld [vmem:[%s1967_s0 + $0x143] sm:$0x1]  ;;  %653 = vst.msk [vmem:[%s1968_s1 + $0x4d] sm:$0x1] %vm575_vm0, %v571_v40  ;;  %v572_v50 = vmax.f32 %v488_v37, %v489_v41 }
  0x87   :  { %v492_v51 = vmax.f32 %v312_v44, %v330_v48  ;;  %v493_v52 = vmax.f32 %v313_v47, %v331_v49  ;;  %v573_v53 = vmax.f32 %v490_v45, %v491_v46 }
  0x88   :  { %654 = vst.msk [vmem:[%s1968_s1 + $0x4e] sm:$0x1] %vm575_vm0, %v572_v50 }
  0x89   :  { %v574_v54 = vmax.f32 %v492_v51, %v493_v52  ;;  %655 = vst.msk [vmem:[%s1968_s1 + $0x4f] sm:$0x1] %vm575_vm0, %v573_v53 }
  0x8b   :  { %656 = vst.msk [vmem:[%s1968_s1 + $0x50] sm:$0x1] %vm575_vm0, %v574_v54 }

</bundles_post_ra>
